<compile_context>
chip_gen: v7x
topology: tpu7x:2x2x1
jax: 0.10.0
libtpu: 0.0.40
codegen_flags: <defaults>
</compile_context>

<pallas_src>
import jax
import jax.numpy as jnp
from jax.experimental import pallas as pl
from jax.experimental.pallas import tpu as pltpu

HIDDEN = 30
ACTION_SCALE = 0.4          # Humanoid-v3 branch of the PyTorch module
LANE = 128
SUBLANE = 8


def _round_up(x, m):
    return ((x + m - 1) // m) * m


def actor_kernel(x_ref, w1_ref, b1_ref, w2_ref, b2_ref, o_ref):
    # fc1 + ReLU: MXU matmul, f32 accumulate, f32 elementwise (bias/relu on VPU).
    h = jnp.dot(x_ref[...], w1_ref[...], preferred_element_type=jnp.float32)
    h = jnp.maximum(h + b1_ref[...], 0.0)
    # out layer: keep h in f32 (MXU accepts f32 LHS) — avoids extra rounding.
    y = jnp.dot(h, w2_ref[...], preferred_element_type=jnp.float32)
    y = y + b2_ref[...]
    # tanh -> EUP slot, scale -> free VPU filler in a mem-bound kernel.
    o_ref[...] = (jnp.tanh(y) * ACTION_SCALE).astype(o_ref.dtype)


def prepare_params(w1, b1, w2, b2, *, param_dtype=jnp.float32):
    """One-time (per parameter set) padding of the hidden axis 30 -> 128.

    Zero padding is semantically inert: padded w1 columns + zero bias give
    relu(0)=0 hidden activations, and padded w2 rows contribute nothing.
    Weights are VMEM-resident in the kernel, so this costs nothing per call.
    """
    s_dim, hidden = w1.shape
    a_dim = w2.shape[1]
    h_pad = _round_up(hidden, LANE)
    w1p = jnp.pad(w1, ((0, 0), (0, h_pad - hidden))).astype(param_dtype)
    b1p = jnp.pad(jnp.reshape(b1, (1, -1)), ((0, 0), (0, h_pad - hidden))).astype(jnp.float32)
    w2p = jnp.pad(w2, ((0, h_pad - hidden), (0, 0))).astype(param_dtype)
    b2p = jnp.reshape(b2, (1, -1)).astype(jnp.float32)
    del s_dim, a_dim
    return w1p, b1p, w2p, b2p


def _choose_batch_tiling(B, block_b):
    """Pick (tb, b_pad) so dead batch padding stays within a few sublane rows."""
    b8 = _round_up(max(B, 1), SUBLANE)
    if b8 <= block_b:
        return b8, b8                      # single grid step, <= 7 padded rows
    num_tiles = (B + block_b - 1) // block_b
    tb = _round_up(-(-B // num_tiles), SUBLANE)
    return tb, tb * num_tiles              # <= 8*num_tiles - 1 padded rows


def actor_forward(x, w1p, b1p, w2p, b2p, *, block_b=4096):
    """x: (B, s_dim); params already prepared via prepare_params().

    Returns (B, a_dim) f32 actions.
    """
    B, s_dim = x.shape
    h_pad = w1p.shape[1]
    a_dim = w2p.shape[1]

    tb, b_pad = _choose_batch_tiling(B, block_b)
    xp = x if b_pad == B else jnp.pad(x, ((0, b_pad - B), (0, 0)))
    grid = (b_pad // tb,)

    flops = 2 * b_pad * (s_dim * h_pad + h_pad * a_dim)
    bytes_accessed = (
        xp.size * xp.dtype.itemsize
        + b_pad * a_dim * 4
        + w1p.size * w1p.dtype.itemsize
        + w2p.size * w2p.dtype.itemsize
        + (b1p.size + b2p.size) * 4
    )

    out = pl.pallas_call(
        actor_kernel,
        out_shape=jax.ShapeDtypeStruct((b_pad, a_dim), jnp.float32),
        grid=grid,
        in_specs=[
            # streamed activations: unpadded feature axis (equals full array dim)
            pl.BlockSpec((tb, s_dim), lambda i: (i, 0)),
            # weights / biases: constant block index -> VMEM-resident across steps
            pl.BlockSpec((s_dim, h_pad), lambda i: (0, 0)),
            pl.BlockSpec((1, h_pad), lambda i: (0, 0)),
            pl.BlockSpec((h_pad, a_dim), lambda i: (0, 0)),
            pl.BlockSpec((1, a_dim), lambda i: (0, 0)),
        ],
        # unpadded output: (tb, a_dim) with a_dim == full array dim
        out_specs=pl.BlockSpec((tb, a_dim), lambda i: (i, 0)),
        compiler_params=pltpu.CompilerParams(
            dimension_semantics=("parallel",),
        ),
        cost_estimate=pl.CostEstimate(
            flops=flops,
            transcendentals=b_pad * a_dim,
            bytes_accessed=bytes_accessed,
        ),
    )(xp, w1p, b1p, w2p, b2p)

    return out if b_pad == B else out[:B]


def init_params(key, s_dim, a_dim):
    """Mirrors the PyTorch init: weights ~ N(0, 0.1); biases ~ default nn.Linear
    uniform U(-1/sqrt(fan_in), 1/sqrt(fan_in))."""
    k1, k2, k3, k4 = jax.random.split(key, 4)
    w1 = jax.random.normal(k1, (s_dim, HIDDEN), jnp.float32) * 0.1
    b1 = jax.random.uniform(
        k2, (1, HIDDEN), jnp.float32, -1.0 / jnp.sqrt(s_dim), 1.0 / jnp.sqrt(s_dim)
    )
    w2 = jax.random.normal(k3, (HIDDEN, a_dim), jnp.float32) * 0.1
    b2 = jax.random.uniform(
        k4, (1, a_dim), jnp.float32, -1.0 / jnp.sqrt(HIDDEN), 1.0 / jnp.sqrt(HIDDEN)
    )
    return w1, b1, w2, b2


def reference_forward(x, w1, b1, w2, b2):
    h = jnp.maximum(x @ w1 + b1, 0.0)
    return jnp.tanh(h @ w2 + b2) * ACTION_SCALE


if __name__ == "__main__":
    # Small shapes consistent with the module: batch=2, s_dim=32, a_dim=8.
    batch, s_dim, a_dim = 2, 32, 8
    key = jax.random.PRNGKey(0)
    kx, kp = jax.random.split(key)
    x = jax.random.normal(kx, (batch, s_dim), jnp.float32)
    w1, b1, w2, b2 = init_params(kp, s_dim, a_dim)

    ref = reference_forward(x, w1, b1, w2, b2)

    # One-time parameter preparation (hoisted out of the per-call forward).
    params = prepare_params(w1, b1, w2, b2)

    out = jax.block_until_ready(actor_forward(x, *params))
    assert out.shape == (batch, a_dim)
    assert jnp.allclose(out, ref, atol=1e-5, rtol=1e-5), "mismatch vs reference"

    # Also exercise a batch that needs (small) batch padding and a multi-step grid.
    big_B = 513
    xb = jax.random.normal(kx, (big_B, s_dim), jnp.float32)
    out_big = jax.block_until_ready(actor_forward(xb, *params, block_b=256))
    ref_big = reference_forward(xb, w1, b1, w2, b2)
    assert out_big.shape == (big_B, a_dim)
    assert jnp.allclose(out_big, ref_big, atol=1e-5, rtol=1e-5), "big-batch mismatch"

    print("KERNEL_OK")
</pallas_src>

<mosaic_0001>
module attributes {stable_mosaic.version = 11 : i64} {
  func.func @actor_kernel(%arg0: i32, %arg1: memref<8x32xf32, #tpu.memory_space<vmem>>, %arg2: memref<32x128xf32, #tpu.memory_space<vmem>>, %arg3: memref<1x128xf32, #tpu.memory_space<vmem>>, %arg4: memref<128x8xf32, #tpu.memory_space<vmem>>, %arg5: memref<1x8xf32, #tpu.memory_space<vmem>>, %arg6: memref<8x8xf32, #tpu.memory_space<vmem>>) attributes {dimension_semantics = [#tpu.dimension_semantics<parallel>], iteration_bounds = array<i64: 1>, scalar_prefetch = 0 : i64, scratch_operands = 0 : i64, tpu.core_type = #tpu.core_type<tc>, window_params = [{transform_indices = @transform_0, window_bounds = array<i64: 8, 32>}, {pipeline_mode = #tpu.pipeline_mode<synchronous>, transform_indices = @transform_1, window_bounds = array<i64: 32, 128>}, {pipeline_mode = #tpu.pipeline_mode<synchronous>, transform_indices = @transform_2, window_bounds = array<i64: 1, 128>}, {pipeline_mode = #tpu.pipeline_mode<synchronous>, transform_indices = @transform_3, window_bounds = array<i64: 128, 8>}, {pipeline_mode = #tpu.pipeline_mode<synchronous>, transform_indices = @transform_4, window_bounds = array<i64: 1, 8>}, {transform_indices = @transform_5, window_bounds = array<i64: 8, 8>}]} {
    %c0 = arith.constant 0 : index
    %c0_0 = arith.constant 0 : index
    %0 = vector.load %arg1[%c0, %c0_0] : memref<8x32xf32, #tpu.memory_space<vmem>>, vector<8x32xf32>
    %c0_1 = arith.constant 0 : index
    %c0_2 = arith.constant 0 : index
    %1 = vector.load %arg2[%c0_1, %c0_2] : memref<32x128xf32, #tpu.memory_space<vmem>>, vector<32x128xf32>
    %cst = arith.constant dense<0.000000e+00> : vector<8x128xf32>
    %2 = tpu.matmul %0, %1, %cst {dimension_numbers = #tpu.dot_dimension_numbers<[1], [0], [0], [1], [0, 0, 1, 1], [], []>} : vector<8x32xf32>, vector<32x128xf32>, vector<8x128xf32> -> vector<8x128xf32>
    %c0_3 = arith.constant 0 : index
    %c0_4 = arith.constant 0 : index
    %3 = vector.load %arg3[%c0_3, %c0_4] : memref<1x128xf32, #tpu.memory_space<vmem>>, vector<1x128xf32>
    %4 = vector.broadcast %3 : vector<1x128xf32> to vector<8x128xf32>
    %5 = arith.addf %2, %4 : vector<8x128xf32>
    %cst_5 = arith.constant 0.000000e+00 : f32
    %6 = vector.broadcast %cst_5 : f32 to vector<8x128xf32>
    %7 = arith.maximumf %5, %6 : vector<8x128xf32>
    %c0_6 = arith.constant 0 : index
    %c0_7 = arith.constant 0 : index
    %8 = vector.load %arg4[%c0_6, %c0_7] : memref<128x8xf32, #tpu.memory_space<vmem>>, vector<128x8xf32>
    %cst_8 = arith.constant dense<0.000000e+00> : vector<8x8xf32>
    %9 = tpu.matmul %7, %8, %cst_8 {dimension_numbers = #tpu.dot_dimension_numbers<[1], [0], [0], [1], [0, 0, 1, 1], [], []>} : vector<8x128xf32>, vector<128x8xf32>, vector<8x8xf32> -> vector<8x8xf32>
    %c0_9 = arith.constant 0 : index
    %c0_10 = arith.constant 0 : index
    %10 = vector.load %arg5[%c0_9, %c0_10] : memref<1x8xf32, #tpu.memory_space<vmem>>, vector<1x8xf32>
    %11 = vector.broadcast %10 : vector<1x8xf32> to vector<8x8xf32>
    %12 = arith.addf %9, %11 : vector<8x8xf32>
    %13 = math.tanh %12 : vector<8x8xf32>
    %cst_11 = arith.constant 4.000000e-01 : f32
    %14 = vector.broadcast %cst_11 : f32 to vector<8x8xf32>
    %15 = arith.mulf %13, %14 : vector<8x8xf32>
    %c0_12 = arith.constant 0 : index
    %c0_13 = arith.constant 0 : index
    %16 = vector.load %arg6[%c0_12, %c0_13] : memref<8x8xf32, #tpu.memory_space<vmem>>, vector<8x8xf32>
    tpu.vector_store %arg6[%c0_12, %c0_13], %15 {strides = array<i32>} : memref<8x8xf32, #tpu.memory_space<vmem>>, vector<8x8xf32>,
    return
  }
  func.func @transform_0(%arg0: i32) -> (i32, i32) {
    %c0_i32 = arith.constant 0 : i32
    %c0_i32_0 = arith.constant 0 : i32
    return %arg0, %c0_i32 : i32, i32
  }
  func.func @transform_1(%arg0: i32) -> (i32, i32) {
    %c0_i32 = arith.constant 0 : i32
    %c0_i32_0 = arith.constant 0 : i32
    %c0_i32_1 = arith.constant 0 : i32
    return %c0_i32, %c0_i32_0 : i32, i32
  }
  func.func @transform_2(%arg0: i32) -> (i32, i32) {
    %c0_i32 = arith.constant 0 : i32
    %c0_i32_0 = arith.constant 0 : i32
    %c0_i32_1 = arith.constant 0 : i32
    return %c0_i32, %c0_i32_0 : i32, i32
  }
  func.func @transform_3(%arg0: i32) -> (i32, i32) {
    %c0_i32 = arith.constant 0 : i32
    %c0_i32_0 = arith.constant 0 : i32
    %c0_i32_1 = arith.constant 0 : i32
    return %c0_i32, %c0_i32_0 : i32, i32
  }
  func.func @transform_4(%arg0: i32) -> (i32, i32) {
    %c0_i32 = arith.constant 0 : i32
    %c0_i32_0 = arith.constant 0 : i32
    %c0_i32_1 = arith.constant 0 : i32
    return %c0_i32, %c0_i32_0 : i32, i32
  }
  func.func @transform_5(%arg0: i32) -> (i32, i32) {
    %c0_i32 = arith.constant 0 : i32
    %c0_i32_0 = arith.constant 0 : i32
    return %arg0, %c0_i32 : i32, i32
  }
}

</mosaic_0001>

<bundles_post_ra>
// kernel: tpu_custom_call.1
= control target key start
LH: loop header
LB: loop body
LE: loop exit
PB: predicated region body
PF: predicated region fallthrough
CT: control target
= control target key end

     0   :  { %v350_v3 = vmov 0.0|0.0   ;;  %vm351_vm0 = vmmov 0   ;;  %v352_v6 = vmov 0.0   ;;  %s465_s0 = inlined_call_operand.vmem [shape: f32[8,32], index: 0, kind: input, shape index: {}]   ;;  %s466_s1 = inlined_call_operand.vmem [shape: f32[32,128], index: 1, kind: input, shape index: {}]   ;;  %s467_s2 = inlined_call_operand.vmem [shape: f32[1,128], index: 2, kind: input, shape index: {}]   ;;  %s468_s3 = inlined_call_operand.vmem [shape: f32[128,8], index: 3, kind: input, shape index: {}]   ;;  %s469_s4 = inlined_call_operand.vmem [shape: f32[1,8], index: 4, kind: input, shape index: {}]   ;;  %s470_s5 = inlined_call_operand.hbm [shape: f32[8,8], index: 5, kind: output, shape index: {}]  }
   0x1   :  { %v22_v0 = vld [vmem:[%s466_s1] sm:$0xff]  ;;  %v23_v1 = vld [vmem:[%s466_s1 + $0x8] sm:$0xff]  ;;  %v24_v2 = vld [vmem:[%s466_s1 + $0x10] sm:$0xff]  ;;  %290 = vmatprep.subr.bf16.mxu0 %v350_v3  ;;  %252 = vmatprep.mubr.msk.f32.mxu0 %vm351_vm0, %v352_v6 }
   0x2   :  { %v291_v4 = vpack.c.bf16 %v23_v1, %v22_v0  ;;  %v25_v5 = vld [vmem:[%s466_s1 + $0x18] sm:$0xff]  ;;  %v108_v7 = vld [vmem:[%s468_s3] sm:$0xff]  ;;  %296 = vmatprep.subr.bf16.mxu1 %v350_v3  ;;  %v109_v8 = vld [vmem:[%s468_s3 + $0x8] sm:$0xff]  ;;  %287 = vmatprep.mubr.msk.f32.mxu1 %vm351_vm0, %v352_v6 }
   0x3   :  { %v110_v9 = vld [vmem:[%s468_s3 + $0x10] sm:$0xff]  ;;  %v111_v10 = vld [vmem:[%s468_s3 + $0x18] sm:$0xff]  ;;  %v294_v11 = vpack.c.bf16 %v25_v5, %v24_v2  ;;  %v297_v12 = vpack.c.bf16 %v109_v8, %v108_v7  ;;  %v112_v14 = vld [vmem:[%s468_s3 + $0x20] sm:$0xff] }
   0x4   :  { %292 = vmatpush3.bf16.msra.mxu0 %v291_v4  ;;  %v300_v13 = vpack.c.bf16 %v111_v10, %v110_v9  ;;  %v113_v15 = vld [vmem:[%s468_s3 + $0x28] sm:$0xff] }
   0x5   :  { %293 = vmatprep.subr.bf16.mxu0 %v350_v3  ;;  %298 = vmatpush3.bf16.msra.mxu1 %v297_v12 }
   0x6   :  { %299 = vmatprep.subr.bf16.mxu1 %v350_v3 }
   0x7   :  { %10 = vsyncpa [#allocation3], 0  ;;  %v21_v16 = vld [vmem:[%s465_s0] sm:$0xff]  ;;  %vm33_vm1 = vcmask 261120   ;;  %v303_v17 = vpack.c.bf16 %v113_v15, %v112_v14  ;;  %v114_v18 = vld [vmem:[%s468_s3 + $0x30] sm:$0xff]  ;;  %vm203_vm2 = vcmask 64512  }
   0x8   :  { %295 = vmatpush3.bf16.msra.mxu0 %v294_v11  ;;  %v115_v19 = vld [vmem:[%s468_s3 + $0x38] sm:$0xff]  ;;  %v116_v21 = vld [vmem:[%s468_s3 + $0x40] sm:$0xff]  ;;  %v117_v22 = vld [vmem:[%s468_s3 + $0x48] sm:$0xff] }
   0x9   :  { %301 = vmatpush3.bf16.msra.mxu1 %v300_v13  ;;  %v306_v20 = vpack.c.bf16 %v115_v19, %v114_v18  ;;  %v309_v23 = vpack.c.bf16 %v117_v22, %v116_v21  ;;  %v118_v24 = vld [vmem:[%s468_s3 + $0x50] sm:$0xff]  ;;  %v119_v25 = vld [vmem:[%s468_s3 + $0x58] sm:$0xff]  ;;  %v120_v27 = vld [vmem:[%s468_s3 + $0x60] sm:$0xff] }
   0xa   :  { %302 = vmatprep.subr.bf16.mxu1 %v350_v3  ;;  %v312_v26 = vpack.c.bf16 %v119_v25, %v118_v24  ;;  %v121_v28 = vld [vmem:[%s468_s3 + $0x68] sm:$0xff]  ;;  %v122_v30 = vld [vmem:[%s468_s3 + $0x70] sm:$0xff]  ;;  %v123_v31 = vld [vmem:[%s468_s3 + $0x78] sm:$0xff]  ;;  %s353_s3 = smov [#allocation2]  }
   0xb   :  { %253 = vmatmul.mubr.msk.f32.vlgmr.msra.gmra.mrb[0].mxu0 %vm33_vm1, %v21_v16  ;;  %v315_v29 = vpack.c.bf16 %v121_v28, %v120_v27  ;;  %v318_v32 = vpack.c.bf16 %v123_v31, %v122_v30  ;;  %v219_v33 = vld [vmem:[%s467_s2] ss:$0 sm:$0xff]  ;;  %s211_s11 = sshll.u32 %s353_s3, 4  ;;  %s212_s11 = int_to_ptr.vmem [resolvable:$true] %s211_s11 }
   0xc   :  { %v221_v38 = vld [vmem:[%s469_s4] ss:$0 sm:$0xff]  ;;  %s326_s2 = scalar_lea.vmem %s212_s11, 128  ;;  %p331_p1 = scmp.lt.s32.totalorder %s212_s11, %s212_s11 }
   0xd   :  { %304 = vmatpush3.bf16.msra.mxu1 %v303_v17  ;;  %p327_p0 = scmp.ne.s32.totalorder %s212_s11, %s326_s2  ;;  %p332_p2 = scmp.lt.s32.totalorder %s326_s2, %s326_s2 }
   0xe   :  { %305 = vmatprep.subr.bf16.mxu1 %v350_v3 }
   0xf   :  { %p333_p3 = por %p332_p2, %p331_p1 }
  0x11   :  { %307 = vmatpush3.bf16.msra.mxu1 %v306_v20  ;;  %p334_p4 = pnand %p333_p3, %p327_p0 }
  0x12   :  { %308 = vmatprep.subr.bf16.mxu1 %v350_v3 }
  0x15   :  { %310 = vmatpush3.bf16.msra.mxu1 %v309_v23 }
  0x16   :  { %311 = vmatprep.subr.bf16.mxu1 %v350_v3 }
  0x19   :  { %313 = vmatpush3.bf16.msra.mxu1 %v312_v26 }
  0x1a   :  { %314 = vmatprep.subr.bf16.mxu1 %v350_v3 }
  0x1d   :  { %316 = vmatpush3.bf16.msra.mxu1 %v315_v29 }
  0x1e   :  { %317 = vmatprep.subr.bf16.mxu1 %v350_v3 }
  0x21   :  { %319 = vmatpush3.bf16.msra.mxu1 %v318_v32 }
  0xde   :  { %v103_v34 = vpop.f32.mrb[0].mxu0 }
  0xdf   :  { %v104_v35 = vadd.f32 %v219_v33, %v103_v34  ;;  %v254_v36 = vpop.f32.mrb[1].mxu0 }
  0xe1   :  { %v107_v37 = vmax.f32 %v104_v35, 0.0 }
  0xe3   :  { %288 = vmatmul.mubr.f32.vlgmr.msra.gmra.mrb[0].mxu1 %v107_v37 }
 0x1b6   :  { %v197_v39 = vpop.f32.mrb[0].mxu1 }
 0x1b7   :  { %v198_v40 = vadd.f32 %v221_v38, %v197_v39  ;;  %v289_v41 = vpop.f32.mrb[1].mxu1 }
 0x1b9   :  { %324 = vtanh.f32 %v198_v40 }
 0x1c3   :  { %v325_v42 = vpop.eup %324 }
 0x1c4   :  { %v202_v43 = vmul.f32 0.4, %v325_v42 }
 0x1c6   :  { %204 = vst.msk [vmem:[#allocation2] sm:$0xff] %vm203_vm2, %v202_v43 }
 0x1c7   :  { %337 = shalt.err (!%p334_p4)
}
 0x1c8   :  { %s338_s13 = scalar_lea.hbm %s470_s5, 128 }
 0x1c9   :  { %p339_p5 = scmp.ne.s32.totalorder %s470_s5, %s338_s13  ;;  %p342_p6 = scmp.lt.u32.totalorder %s338_s13, %s470_s5 }
 0x1cb   :  { %p344_p7 = pnand %p342_p6, %p339_p5 }
 0x1cd   :  { %347 = shalt.err (!%p344_p7)
}
 0x1ce   :  { %214 = dma.vmem_to_hbm [thread:$0]  %s212_s11, 128, %s470_s5, [#allocation3]  }
 0x1cf   :  { %348 = dma.done.wait [#allocation3], 128  }
 0x1d0   :  { %349 = vsyncadd [#allocation3], 4294967168 }
 0x1d1   :  { %218 = vsyncpa [#allocation3], 1 }

</bundles_post_ra>
